<compile_context>
chip_gen: v7x
topology: tpu7x:2x2x1
jax: 0.10.0
libtpu: 0.0.40
codegen_flags: <defaults>
</compile_context>

<pallas_src>
import jax
import jax.numpy as jnp
from jax.experimental import pallas as pl
from jax.experimental.pallas import tpu as pltpu


def _ffn_kernel(x_ref, w1_ref, b1_ref, w2_ref, b2_ref, w3_ref, b3_ref, o_ref):
    # Cast the streamed x block to the (pre-cast) weight dtype in VMEM; no-op in f32 mode.
    x = x_ref[...].astype(w1_ref.dtype)
    # Layer 1: Linear + ReLU  (f32 accumulation on the MXU, f32 activation math)
    h = jnp.dot(x, w1_ref[...], preferred_element_type=jnp.float32) + b1_ref[...]
    h = jnp.maximum(h, 0.0)
    # Layer 2: Linear + Tanh
    h = jnp.dot(h.astype(w2_ref.dtype), w2_ref[...],
                preferred_element_type=jnp.float32) + b2_ref[...]
    h = jnp.tanh(h)
    # Output layer: Linear (no activation, matches the trailing nn.Linear)
    o_ref[...] = (
        jnp.dot(h.astype(w3_ref.dtype), w3_ref[...],
                preferred_element_type=jnp.float32) + b3_ref[...]
    ).astype(o_ref.dtype)


def _round_up(n, m):
    return ((n + m - 1) // m) * m


def prepare_params(params, matmul_dtype=None):
    """One-time parameter prep: optionally cast weights to a narrow MXU dtype.

    Biases stay f32 (added to the f32 accumulator).  Do this ONCE, outside any
    per-step loop — weights are tiny and stay resident across the kernel grid.
    """
    w1, b1, w2, b2, w3, b3 = params
    if matmul_dtype is not None:
        dt = jnp.dtype(matmul_dtype)
        w1, w2, w3 = (w.astype(dt) for w in (w1, w2, w3))
    b1, b2, b3 = (b.astype(jnp.float32) for b in (b1, b2, b3))
    return (w1, b1, w2, b2, w3, b3)


def feed_forward_net(x, params, *, tile_b=1024, core_parallel=False):
    """Fused MLP. params = (w1, b1, w2, b2, w3, b3) with wi: [in, out], bi: [1, out].

    tile_b:        batch rows per grid step (rounded to a multiple of 8).  1024-2048
                   is a good default for large batches on v5e/v6e/v7x.
    core_parallel: opt-in for v7x — caps the tile so the grid has >= 2 steps and
                   marks the batch axis CORE_PARALLEL to split across both TCs.
    """
    w1, b1, w2, b2, w3, b3 = params
    B, ip_dim = x.shape
    h1, h2, op_dim = w1.shape[1], w2.shape[1], w3.shape[1]

    # ---- batch tiling: multiple of 8 sublanes; no explicit batch pad (ragged last block) ----
    tile = min(_round_up(max(tile_b, 8), 8), _round_up(B, 8))
    if core_parallel and B >= 16:
        tile = min(tile, _round_up(pl.cdiv(B, 2), 8))  # >= 2 grid steps for the 2 TCs
    grid = (pl.cdiv(B, tile),)

    # x / out tiled over the batch axis at their REAL feature widths (full-array last dim
    # is legal); weights & biases resident via constant index_maps (full-array blocks).
    x_spec = pl.BlockSpec((tile, ip_dim), lambda i: (i, 0))
    out_spec = pl.BlockSpec((tile, op_dim), lambda i: (i, 0))
    full = lambda a: pl.BlockSpec(a.shape, lambda i: (0, 0))

    # Advisory cost so XLA can overlap this small call against surrounding ops.
    flops = 2 * B * (ip_dim * h1 + h1 * h2 + h2 * op_dim)
    bytes_accessed = int(
        x.size * x.dtype.itemsize
        + sum(a.size * a.dtype.itemsize for a in (w1, b1, w2, b2, w3, b3))
        + B * op_dim * x.dtype.itemsize
    )
    cost = pl.CostEstimate(flops=flops, transcendentals=B * h2, bytes_accessed=bytes_accessed)

    sem = (pltpu.CORE_PARALLEL,) if core_parallel else ("parallel",)

    return pl.pallas_call(
        _ffn_kernel,
        out_shape=jax.ShapeDtypeStruct((B, op_dim), x.dtype),
        grid_spec=pltpu.PrefetchScalarGridSpec(
            num_scalar_prefetch=0,
            grid=grid,
            in_specs=[x_spec, full(w1), full(b1), full(w2), full(b2), full(w3), full(b3)],
            out_specs=out_spec,
        ),
        compiler_params=pltpu.CompilerParams(
            dimension_semantics=sem,
            vmem_limit_bytes=32 * 1024 * 1024,  # safe on v5e/v6e/v7x; usage here is ~KBs
        ),
        cost_estimate=cost,
    )(x, w1, b1, w2, b2, w3, b3)


def init_params(key, ip_dim, op_dim, units_list):
    """Deterministic torch.nn.Linear-style init (uniform +/- 1/sqrt(fan_in)).

    Weights are pre-transposed to [in_dim, out_dim]; biases are [1, out_dim].
    """
    dims = [ip_dim] + list(units_list) + [op_dim]
    params = []
    for d_in, d_out in zip(dims[:-1], dims[1:]):
        key, kw, kb = jax.random.split(key, 3)
        bound = 1.0 / jnp.sqrt(jnp.float32(d_in))
        w = jax.random.uniform(kw, (d_in, d_out), jnp.float32, -bound, bound)
        b = jax.random.uniform(kb, (1, d_out), jnp.float32, -bound, bound)
        params.extend([w, b])
    return tuple(params)


def ffn_reference(x, params):
    """Pure-JAX reference mirroring nn.Sequential(Linear, ReLU, Linear, Tanh, Linear)."""
    w1, b1, w2, b2, w3, b3 = params
    h = jnp.maximum(x @ w1 + b1, 0.0)
    h = jnp.tanh(h @ w2 + b2)
    return h @ w3 + b3


if __name__ == "__main__":
    # FeedForwardNet(ip_dim=32, op_dim=16, units_list=[64, 64], activ_list=['ReLU', 'Tanh'])
    ip_dim, op_dim = 32, 16
    units_list = [64, 64]

    key = jax.random.PRNGKey(0)
    key, kx1 = jax.random.split(key)
    params = init_params(key, ip_dim, op_dim, units_list)
    params_f32 = prepare_params(params)                       # one-time prep, f32 weights
    params_bf16 = prepare_params(params, jnp.bfloat16)        # one-time prep, bf16 weights

    # Run 1: multi-step grid (tile_b=16, B=48 -> grid=(3,)), f32 operands.
    x1 = jax.random.normal(kx1, (48, ip_dim), jnp.float32)
    out1 = jax.block_until_ready(feed_forward_net(x1, params_f32, tile_b=16))
    ref1 = ffn_reference(x1, params)
    assert out1.shape == (48, op_dim)
    assert jnp.allclose(out1, ref1, atol=1e-5, rtol=1e-4)

    # Run 2: batch not a multiple of 8 / tile (ragged last block), default tile_b.
    key, kx2 = jax.random.split(key)
    x2 = jax.random.normal(kx2, (50, ip_dim), jnp.float32)
    out2 = jax.block_until_ready(feed_forward_net(x2, params_f32))
    ref2 = ffn_reference(x2, params)
    assert out2.shape == (50, op_dim)
    assert jnp.allclose(out2, ref2, atol=1e-5, rtol=1e-4)

    # Run 3: bf16 MXU operands (cast in-kernel) with f32 accumulation + f32 activations.
    key, kx3 = jax.random.split(key)
    x3 = jax.random.normal(kx3, (64, ip_dim), jnp.float32)
    out3 = jax.block_until_ready(feed_forward_net(x3, params_bf16, tile_b=64))
    ref3 = ffn_reference(x3, params)
    assert out3.shape == (64, op_dim)
    assert jnp.allclose(out3, ref3, atol=5e-2, rtol=5e-2)

    # TODO(synk): run with core_parallel=True on v7x parts to split the batch grid
    # across both TensorCores (left off by default so the script runs on any TPU gen).

    print("KERNEL_OK")
</pallas_src>

<mosaic_0001>
module attributes {stable_mosaic.version = 11 : i64} {
  func.func @_ffn_kernel(%arg0: i32, %arg1: memref<16x32xf32, #tpu.memory_space<vmem>>, %arg2: memref<32x64xf32, #tpu.memory_space<vmem>>, %arg3: memref<1x64xf32, #tpu.memory_space<vmem>>, %arg4: memref<64x64xf32, #tpu.memory_space<vmem>>, %arg5: memref<1x64xf32, #tpu.memory_space<vmem>>, %arg6: memref<64x16xf32, #tpu.memory_space<vmem>>, %arg7: memref<1x16xf32, #tpu.memory_space<vmem>>, %arg8: memref<16x16xf32, #tpu.memory_space<vmem>>) attributes {dimension_semantics = [#tpu.dimension_semantics<parallel>], iteration_bounds = array<i64: 3>, scalar_prefetch = 0 : i64, scratch_operands = 0 : i64, tpu.core_type = #tpu.core_type<tc>, window_params = [{transform_indices = @transform_0, window_bounds = array<i64: 16, 32>}, {pipeline_mode = #tpu.pipeline_mode<synchronous>, transform_indices = @transform_1, window_bounds = array<i64: 32, 64>}, {pipeline_mode = #tpu.pipeline_mode<synchronous>, transform_indices = @transform_2, window_bounds = array<i64: 1, 64>}, {pipeline_mode = #tpu.pipeline_mode<synchronous>, transform_indices = @transform_3, window_bounds = array<i64: 64, 64>}, {pipeline_mode = #tpu.pipeline_mode<synchronous>, transform_indices = @transform_4, window_bounds = array<i64: 1, 64>}, {pipeline_mode = #tpu.pipeline_mode<synchronous>, transform_indices = @transform_5, window_bounds = array<i64: 64, 16>}, {pipeline_mode = #tpu.pipeline_mode<synchronous>, transform_indices = @transform_6, window_bounds = array<i64: 1, 16>}, {transform_indices = @transform_7, window_bounds = array<i64: 16, 16>}]} {
    %c0 = arith.constant 0 : index
    %c0_0 = arith.constant 0 : index
    %0 = vector.load %arg1[%c0, %c0_0] : memref<16x32xf32, #tpu.memory_space<vmem>>, vector<16x32xf32>
    %c0_1 = arith.constant 0 : index
    %c0_2 = arith.constant 0 : index
    %1 = vector.load %arg2[%c0_1, %c0_2] : memref<32x64xf32, #tpu.memory_space<vmem>>, vector<32x64xf32>
    %cst = arith.constant dense<0.000000e+00> : vector<16x64xf32>
    %2 = tpu.matmul %0, %1, %cst {dimension_numbers = #tpu.dot_dimension_numbers<[1], [0], [0], [1], [0, 0, 1, 1], [], []>} : vector<16x32xf32>, vector<32x64xf32>, vector<16x64xf32> -> vector<16x64xf32>
    %c0_3 = arith.constant 0 : index
    %c0_4 = arith.constant 0 : index
    %3 = vector.load %arg3[%c0_3, %c0_4] : memref<1x64xf32, #tpu.memory_space<vmem>>, vector<1x64xf32>
    %4 = vector.broadcast %3 : vector<1x64xf32> to vector<16x64xf32>
    %5 = arith.addf %2, %4 : vector<16x64xf32>
    %cst_5 = arith.constant 0.000000e+00 : f32
    %6 = vector.broadcast %cst_5 : f32 to vector<16x64xf32>
    %7 = arith.maximumf %5, %6 : vector<16x64xf32>
    %c0_6 = arith.constant 0 : index
    %c0_7 = arith.constant 0 : index
    %8 = vector.load %arg4[%c0_6, %c0_7] : memref<64x64xf32, #tpu.memory_space<vmem>>, vector<64x64xf32>
    %cst_8 = arith.constant dense<0.000000e+00> : vector<16x64xf32>
    %9 = tpu.matmul %7, %8, %cst_8 {dimension_numbers = #tpu.dot_dimension_numbers<[1], [0], [0], [1], [0, 0, 1, 1], [], []>} : vector<16x64xf32>, vector<64x64xf32>, vector<16x64xf32> -> vector<16x64xf32>
    %c0_9 = arith.constant 0 : index
    %c0_10 = arith.constant 0 : index
    %10 = vector.load %arg5[%c0_9, %c0_10] : memref<1x64xf32, #tpu.memory_space<vmem>>, vector<1x64xf32>
    %11 = vector.broadcast %10 : vector<1x64xf32> to vector<16x64xf32>
    %12 = arith.addf %9, %11 : vector<16x64xf32>
    %13 = math.tanh %12 : vector<16x64xf32>
    %c0_11 = arith.constant 0 : index
    %c0_12 = arith.constant 0 : index
    %14 = vector.load %arg6[%c0_11, %c0_12] : memref<64x16xf32, #tpu.memory_space<vmem>>, vector<64x16xf32>
    %cst_13 = arith.constant dense<0.000000e+00> : vector<16x16xf32>
    %15 = tpu.matmul %13, %14, %cst_13 {dimension_numbers = #tpu.dot_dimension_numbers<[1], [0], [0], [1], [0, 0, 1, 1], [], []>} : vector<16x64xf32>, vector<64x16xf32>, vector<16x16xf32> -> vector<16x16xf32>
    %c0_14 = arith.constant 0 : index
    %c0_15 = arith.constant 0 : index
    %16 = vector.load %arg7[%c0_14, %c0_15] : memref<1x16xf32, #tpu.memory_space<vmem>>, vector<1x16xf32>
    %17 = vector.broadcast %16 : vector<1x16xf32> to vector<16x16xf32>
    %18 = arith.addf %15, %17 : vector<16x16xf32>
    %c0_16 = arith.constant 0 : index
    %c0_17 = arith.constant 0 : index
    %19 = vector.load %arg8[%c0_16, %c0_17] : memref<16x16xf32, #tpu.memory_space<vmem>>, vector<16x16xf32>
    tpu.vector_store %arg8[%c0_16, %c0_17], %18 {strides = array<i32>} : memref<16x16xf32, #tpu.memory_space<vmem>>, vector<16x16xf32>,
    return
  }
  func.func @transform_0(%arg0: i32) -> (i32, i32) {
    %c0_i32 = arith.constant 0 : i32
    %c0_i32_0 = arith.constant 0 : i32
    return %arg0, %c0_i32 : i32, i32
  }
  func.func @transform_1(%arg0: i32) -> (i32, i32) {
    %c0_i32 = arith.constant 0 : i32
    %c0_i32_0 = arith.constant 0 : i32
    %c0_i32_1 = arith.constant 0 : i32
    return %c0_i32, %c0_i32_0 : i32, i32
  }
  func.func @transform_2(%arg0: i32) -> (i32, i32) {
    %c0_i32 = arith.constant 0 : i32
    %c0_i32_0 = arith.constant 0 : i32
    %c0_i32_1 = arith.constant 0 : i32
    return %c0_i32, %c0_i32_0 : i32, i32
  }
  func.func @transform_3(%arg0: i32) -> (i32, i32) {
    %c0_i32 = arith.constant 0 : i32
    %c0_i32_0 = arith.constant 0 : i32
    %c0_i32_1 = arith.constant 0 : i32
    return %c0_i32, %c0_i32_0 : i32, i32
  }
  func.func @transform_4(%arg0: i32) -> (i32, i32) {
    %c0_i32 = arith.constant 0 : i32
    %c0_i32_0 = arith.constant 0 : i32
    %c0_i32_1 = arith.constant 0 : i32
    return %c0_i32, %c0_i32_0 : i32, i32
  }
  func.func @transform_5(%arg0: i32) -> (i32, i32) {
    %c0_i32 = arith.constant 0 : i32
    %c0_i32_0 = arith.constant 0 : i32
    %c0_i32_1 = arith.constant 0 : i32
    return %c0_i32, %c0_i32_0 : i32, i32
  }
  func.func @transform_6(%arg0: i32) -> (i32, i32) {
    %c0_i32 = arith.constant 0 : i32
    %c0_i32_0 = arith.constant 0 : i32
    %c0_i32_1 = arith.constant 0 : i32
    return %c0_i32, %c0_i32_0 : i32, i32
  }
  func.func @transform_7(%arg0: i32) -> (i32, i32) {
    %c0_i32 = arith.constant 0 : i32
    %c0_i32_0 = arith.constant 0 : i32
    return %arg0, %c0_i32 : i32, i32
  }
}

</mosaic_0001>

<bundles_post_ra>
// kernel: tpu_custom_call.1
= control target key start
LH: loop header
LB: loop body
LE: loop exit
PB: predicated region body
PF: predicated region fallthrough
CT: control target
= control target key end

     0   :  { %s828_s24 = smov 0   ;;  %s925_s0 = inlined_call_operand.vmem [shape: f32[48,32], index: 0, kind: input, shape index: {}]   ;;  %s926_s1 = inlined_call_operand.vmem [shape: f32[32,64], index: 1, kind: input, shape index: {}]   ;;  %s927_s2 = inlined_call_operand.vmem [shape: f32[1,64], index: 2, kind: input, shape index: {}]   ;;  %s928_s3 = inlined_call_operand.vmem [shape: f32[64,64], index: 3, kind: input, shape index: {}]   ;;  %s929_s4 = inlined_call_operand.vmem [shape: f32[1,64], index: 4, kind: input, shape index: {}]   ;;  %s930_s5 = inlined_call_operand.vmem [shape: f32[64,16], index: 5, kind: input, shape index: {}]   ;;  %s931_s6 = inlined_call_operand.vmem [shape: f32[1,16], index: 6, kind: input, shape index: {}]   ;;  %s932_s7 = inlined_call_operand.vmem [shape: f32[48,16], index: 7, kind: output, shape index: {}]  }
   0x1 LB: > { %s633_s25 = sadd.s32 4294967295, %s786_s24   ;;  %p637_p0 = scmp.ge.s32.totalorder %s786_s24, 1  ;;  %s786_s24 = sphi %s828_s24, %s17_s24  }
   0x2   : > { %p238_p1 = scmp.lt.s32.totalorder %s786_s24, 4 }
   0x4   : > { %p239_p2 = pnand %p637_p0, %p238_p1 }
   0x5   : > { %v284_v0 = vld [vmem:[%s926_s1] sm:$0xff] (!%p239_p2)  ;;  %v285_v1 = vld [vmem:[%s926_s1 + $0x8] sm:$0xff] (!%p239_p2)  ;;  %v286_v2 = vld [vmem:[%s926_s1 + $0x10] sm:$0xff] (!%p239_p2)  ;;  %s638_s9 = sshll.u32 (!%p239_p2), %s633_s25, 1  ;;  %vm295_vm0 = vcmask (!%p239_p2), 261120   ;;  %vm394_vm1 = vcmask (!%p239_p2), 523264  }
   0x6   : > { %242 = sbr.rel (%p239_p2) target bundleno = 679 (0x2a7), region = 48  ;;  %v728_v3 = vpack.c.bf16 (!%p239_p2), %v285_v1, %v284_v0  ;;  %v287_v4 = vld [vmem:[%s926_s1 + $0x18] sm:$0xff] (!%p239_p2)  ;;  %p271_p3 = scmp.lt.s32.totalorder (!%p239_p2), %s638_s9, 5  ;;  %v379_v5 = vld [vmem:[%s928_s3] sm:$0xff] (!%p239_p2)  ;;  %v380_v6 = vld [vmem:[%s928_s3 + $0x8] sm:$0xff] (!%p239_p2)  ;;  %vm574_vm2 = vcmask (!%p239_p2), 130048  }
   0x7   : > { %v732_v7 = vpack.c.bf16 (!%p239_p2), %v287_v4, %v286_v2  ;;  %v736_v8 = vpack.c.bf16 (!%p239_p2), %v380_v6, %v379_v5  ;;  %v381_v9 = vld [vmem:[%s928_s3 + $0x10] sm:$0xff] (!%p239_p2)  ;;  %v382_v10 = vld [vmem:[%s928_s3 + $0x18] sm:$0xff] (!%p239_p2)  ;;  %v383_v12 = vld [vmem:[%s928_s3 + $0x20] sm:$0xff] (!%p239_p2) }
   0x8   : > { %729 = vmatprep.subr.bf16.mxu0 (!%p239_p2), %v728_v3  ;;  %v740_v11 = vpack.c.bf16 (!%p239_p2), %v382_v10, %v381_v9  ;;  %v384_v13 = vld [vmem:[%s928_s3 + $0x28] sm:$0xff] (!%p239_p2)  ;;  %v385_v17 = vld [vmem:[%s928_s3 + $0x30] sm:$0xff] (!%p239_p2)  ;;  %v386_v18 = vld [vmem:[%s928_s3 + $0x38] sm:$0xff] (!%p239_p2) }
   0x9   : > { %731 = vmatpush3.bf16.msra.mxu0 (!%p239_p2), %v728_v3  ;;  %737 = vmatprep.subr.bf16.mxu1 (!%p239_p2), %v736_v8  ;;  %v744_v14 = vpack.c.bf16 (!%p239_p2), %v384_v13, %v383_v12  ;;  %v748_v19 = vpack.c.bf16 (!%p239_p2), %v386_v18, %v385_v17  ;;  %v642_v20 = vld [vmem:[%s927_s2] ss:$0 sm:$0xff] (!%p239_p2)  ;;  %v479_v28 = vld [vmem:[%s930_s5 + $0x8] sm:$0xff] (!%p239_p2)  ;;  %v480_v30 = vld [vmem:[%s930_s5 + $0x10] sm:$0xff] (!%p239_p2) }
   0xa   : > { %733 = vmatprep.subr.bf16.mxu0 (!%p239_p2), %v732_v7  ;;  %739 = vmatpush3.bf16.msra.mxu1 (!%p239_p2), %v736_v8  ;;  %v478_v27 = vld [vmem:[%s930_s5] sm:$0xff] (!%p239_p2)  ;;  %v481_v31 = vld [vmem:[%s930_s5 + $0x18] sm:$0xff] (!%p239_p2)  ;;  %v483_v34 = vld [vmem:[%s930_s5 + $0x28] sm:$0xff] (!%p239_p2) }
   0xb   : > { %741 = vmatprep.subr.bf16.mxu1 (!%p239_p2), %v740_v11  ;;  %v752_v29 = vpack.c.bf16 (!%p239_p2), %v479_v28, %v478_v27  ;;  %v756_v32 = vpack.c.bf16 (!%p239_p2), %v481_v31, %v480_v30  ;;  %v482_v33 = vld [vmem:[%s930_s5 + $0x20] sm:$0xff] (!%p239_p2)  ;;  %v484_v35 = vld [vmem:[%s930_s5 + $0x30] sm:$0xff] (!%p239_p2)  ;;  %v485_v37 = vld [vmem:[%s930_s5 + $0x38] sm:$0xff] (!%p239_p2) }
   0xc   : > { %v760_v36 = vpack.c.bf16 (!%p239_p2), %v483_v34, %v482_v33  ;;  %v764_v38 = vpack.c.bf16 (!%p239_p2), %v485_v37, %v484_v35  ;;  %v645_v39 = vld [vmem:[%s929_s4] ss:$0 sm:$0xff] (!%p239_p2) }
   0xd   : > { %s934_s9 = smov (!%p271_p3, %s638_s9), 5  ;;  %735 = vmatpush3.bf16.msra.mxu0 %v732_v7  ;;  %v648_v46 = vld [vmem:[%s931_s6] ss:$0 sm:$0xff] }
   0xe   : > { %s639_s25 = sshll.u32 %s934_s9, 3  ;;  %743 = vmatpush3.bf16.msra.mxu1 %v740_v11  ;;  %753 = vmatprep.subr.bf16.mxu0 %v752_v29 }
   0xf   : > { %s274_s28 = scalar_lea.vmem %s925_s0, %s639_s25  ;;  %745 = vmatprep.subr.bf16.mxu1 %v744_v14  ;;  %s280_s15 = scalar_lea.vmem %s932_s7, %s639_s25 }
  0x10   : > { %v282_v15 = vld [vmem:[%s274_s28] sm:$0xff]  ;;  %v283_v16 = vld [vmem:[%s274_s28 + $0x8] sm:$0xff] }
  0x11   : > { %687 = vmatprep.mubr.msk.f32.mxu0 %vm295_vm0, %v282_v15 }
  0x12   : > { %688 = vmatmul.mubr.msk.f32.vlgmr.msra.gmra.mrb[0].mxu0 %vm295_vm0, %v283_v16  ;;  %747 = vmatpush3.bf16.msra.mxu1 %v744_v14 }
  0x13   : > { %749 = vmatprep.subr.bf16.mxu1 %v748_v19  ;;  %755 = vmatpush3.bf16.msra.mxu0 %v752_v29 }
  0x14   : > { %757 = vmatprep.subr.bf16.mxu0 %v756_v32 }
  0x16   : > { %751 = vmatpush3.bf16.msra.mxu1 %v748_v19 }
  0x17   : > { %759 = vmatpush3.bf16.msra.mxu0 %v756_v32 }
  0x18   : > { %761 = vmatprep.subr.bf16.mxu0 %v760_v36 }
  0x1b   : > { %763 = vmatpush3.bf16.msra.mxu0 %v760_v36 }
  0x1c   : > { %765 = vmatprep.subr.bf16.mxu0 %v764_v38 }
  0x1f   : > { %767 = vmatpush3.bf16.msra.mxu0 %v764_v38 }
  0xe5   : > { %v689_v21 = vpop.f32.mrb[0].mxu0 }
  0xe6   : > { %v374_v22 = vadd.f32 %v689_v21, %v642_v20  ;;  %v368_v23 = vpop.f32.mrb[1].mxu0 }
  0xe7   : > { %v369_v24 = vadd.f32 %v642_v20, %v368_v23 }
  0xe8   : > { %v378_v26 = vmax.f32 %v374_v22, 0.0 }
  0xe9   : > { %v377_v25 = vmax.f32 %v369_v24, 0.0 }
  0xeb   : > { %706 = vmatprep.mubr.msk.f32.mxu1 %vm394_vm1, %v377_v25 }
  0xec   : > { %707 = vmatmul.mubr.msk.f32.vlgmr.msra.gmra.mrb[0].mxu1 %vm394_vm1, %v378_v26 }
 0x1bf   : > { %v708_v40 = vpop.f32.mrb[0].mxu1 }
 0x1c0   : > { %v473_v41 = vadd.f32 %v708_v40, %v645_v39  ;;  %v467_v42 = vpop.f32.mrb[1].mxu1 }
 0x1c1   : > { %v468_v43 = vadd.f32 %v645_v39, %v467_v42 }
 0x1c3   : > { %776 = vtanh.f32 %v468_v43 }
 0x1c4   : > { %778 = vtanh.f32 %v473_v41 }
 0x1cd   : > { %v777_v44 = vpop.eup %776 }
 0x1ce   : > { %v779_v45 = vpop.eup %778  ;;  %725 = vmatprep.mubr.msk.f32.mxu0 %vm394_vm1, %v777_v44 }
 0x1cf   : > { %726 = vmatmul.mubr.msk.f32.vlgmr.msra.gmra.mrb[2].mxu0 %vm394_vm1, %v779_v45 }
 0x2a2   : > { %v727_v47 = vpop.f32.mrb[2].mxu0 }
 0x2a3   : > { %v565_v48 = vpop.f32.mrb[3].mxu0  ;;  %v571_v50 = vadd.f32 %v727_v47, %v648_v46 }
 0x2a4   : > { %v566_v49 = vadd.f32 %v648_v46, %v565_v48 }
 0x2a5   : > { %576 = vst.msk [vmem:[%s280_s15 + $0x8] sm:$0xff] %vm574_vm2, %v571_v50 }
 0x2a6   : > { %575 = vst.msk [vmem:[%s280_s15] sm:$0xff] %vm574_vm2, %v566_v49 }
 0x2a7 PF: > { %s17_s24 = sadd.s32 1, %s786_s24  }
 0x2a8   : > { %p14_p4 = scmp.ge.s32.totalorder %s17_s24, 5  }
 0x2aa   :  { %16 = sbr.rel (!%p14_p4) target bundleno = 1 (0x1), region = 78 }

</bundles_post_ra>
